<compile_context>
chip_gen: v7x
topology: tpu7x:2x2x1
jax: 0.10.0
libtpu: 0.0.40
codegen_flags: <defaults>
</compile_context>

<pallas_src>
import functools

import jax
import jax.numpy as jnp
from jax.experimental import pallas as pl
from jax.experimental.pallas import tpu as pltpu


def _corr_kernel(x_ref, y_ref, wt_ref, b_ref, *rest, depth, f):
    """One row-tile of the repeated (shared-weight) Linear+ReLU stack.

    x_ref : [TM, F]     left half of the concatenated input
    y_ref : [TM, F]     right half of the concatenated input
    wt_ref: [2F, 2F]    W.T  (so every layer is z @ W.T, matching nn.Linear)
    b_ref : [1, 2F]     bias
    rest  : 1 or 2 output refs ([TM, 2F] or [TM, F] x 2) + z0 VMEM scratch [TM, 2F]
    """
    o_refs, z0_ref = rest[:-1], rest[-1]
    carry_dtype = z0_ref.dtype          # input dtype, or matmul_dtype if requested

    wt = wt_ref[...]
    # Hoist the bias load/cast out of the depth loop; the (1, 2F) -> (TM, 2F)
    # broadcast stays implicit in the add (cheap sublane splat).
    bias = b_ref[...].astype(jnp.float32)

    # Build the lane-dense concat [x | y] once in VMEM so layer 0 is a single
    # K=2F matmul (one MXU pass) instead of two K=F matmuls.
    z0_ref[:, :f] = x_ref[...].astype(carry_dtype)
    z0_ref[:, f:] = y_ref[...].astype(carry_dtype)
    z_mm = z0_ref[...]

    z_f32 = None
    for layer in range(depth):          # depth is small (2); unrolled Python loop
        acc = jnp.dot(z_mm, wt, preferred_element_type=jnp.float32)
        z_f32 = jnp.maximum(acc + bias, 0.0)   # dropout = identity (eval mode)
        if layer + 1 < depth:
            z_mm = z_f32.astype(carry_dtype)   # same weights reused every layer

    if len(o_refs) == 1:
        o_refs[0][...] = z_f32.astype(o_refs[0].dtype)
    else:
        o_refs[0][...] = z_f32[:, :f].astype(o_refs[0].dtype)
        o_refs[1][...] = z_f32[:, f:].astype(o_refs[1].dtype)


def _choose_tm(n_rows, requested, f, two_f, itemsize):
    """Pick the row tile: big (overhead amortization), VMEM-safe, multi-step grid."""
    n8 = ((n_rows + 7) // 8) * 8
    tm = max(8, min((requested // 8) * 8, n8))

    def vmem_est(t):
        in_b = 2 * t * f * itemsize                 # x + y tiles
        out_b = t * two_f * itemsize                # output tile(s), total width 2F
        dbuf = 2 * (in_b + out_b)                   # double-buffered pipeline
        wts = 2 * two_f * two_f * itemsize          # grid-resident W.T (+ tiny bias)
        z0 = t * two_f * max(itemsize, 2)           # concat scratch
        temps = 3 * t * two_f * 4                   # f32 intermediates (acc/relu/carry)
        return dbuf + wts + z0 + temps + (1 << 20)  # +1 MiB slack

    # Stay inside the explicit 32 MiB scoped-VMEM budget (safe on v5e/v6e/v7x).
    while tm > 512 and vmem_est(tm) > 26 * 1024 * 1024:
        tm = max(512, ((tm // 2) // 8) * 8)

    def steps(t):
        return (n_rows + t - 1) // t

    # Give the row grid >= 8 steps when big enough (pipeline depth + v7x dual-TC
    # sharding) without dropping below 512-row tiles (per-step overhead).
    while tm > 512 and steps(tm) < 8:
        tm = max(512, ((tm // 2) // 8) * 8)
    # Small problems: still guarantee >= 2 grid steps so both v7x cores get work.
    if steps(tm) < 2 and n8 >= 16:
        tm = ((n8 // 2 + 7) // 8) * 8
    return tm


def correlation_map_forward(x, y, w, b, *, depth=2, tm=None, matmul_dtype=None):
    """JAX/Pallas equivalent of correlation_map.forward.

    x, y : [B, C, H, F]   (F == size_features)
    w    : [2F, 2F]       nn.Linear weight (out_features, in_features)
    b    : [2F]           nn.Linear bias
    matmul_dtype : optional MXU operand dtype (e.g. jnp.bfloat16) — numerics tradeoff.
    returns (x_out, y_out), each [B, C, H, F]
    """
    assert x.ndim == 4 and y.ndim == 4 and x.shape == y.shape
    assert depth >= 1
    B, C, H, F = x.shape
    two_f = 2 * F
    assert w.shape == (two_f, two_f) and b.shape == (two_f,)
    assert two_f % 128 == 0, "2*size_features must be lane-aligned (multiple of 128)"

    N = B * C * H
    x2 = x.reshape(N, F)                  # free reshapes (no concat, no pad)
    y2 = y.reshape(N, F)

    wt = w.T                              # pre-transpose so the kernel does z @ W.T
    if matmul_dtype is not None:
        wt = wt.astype(matmul_dtype)      # tiny array; cast once in the wrapper
    b2 = b.reshape(1, two_f)

    itemsize = jnp.dtype(x.dtype).itemsize
    if tm is None:
        tm = 4096 if two_f <= 128 else 2048
    tm = _choose_tm(N, tm, F, two_f, itemsize)
    grid = pl.cdiv(N, tm)                 # ragged tail block handled by Pallas

    carry_dtype = matmul_dtype if matmul_dtype is not None else x.dtype
    split_out = (F % 128 == 0)            # lane-aligned halves -> emit (x, y) directly
    if split_out:
        out_shape = (jax.ShapeDtypeStruct((N, F), x.dtype),
                     jax.ShapeDtypeStruct((N, F), x.dtype))
        out_specs = [pl.BlockSpec((tm, F), lambda i: (i, 0)),
                     pl.BlockSpec((tm, F), lambda i: (i, 0))]
    else:
        out_shape = jax.ShapeDtypeStruct((N, two_f), x.dtype)
        out_specs = pl.BlockSpec((tm, two_f), lambda i: (i, 0))

    out = pl.pallas_call(
        functools.partial(_corr_kernel, depth=depth, f=F),
        out_shape=out_shape,
        grid_spec=pltpu.PrefetchScalarGridSpec(
            num_scalar_prefetch=0,
            grid=(grid,),
            in_specs=[
                pl.BlockSpec((tm, F), lambda i: (i, 0)),          # x rows
                pl.BlockSpec((tm, F), lambda i: (i, 0)),          # y rows
                pl.BlockSpec((two_f, two_f), lambda i: (0, 0)),   # W.T (grid-resident)
                pl.BlockSpec((1, two_f), lambda i: (0, 0)),       # bias (grid-resident)
            ],
            out_specs=out_specs,
            scratch_shapes=[pltpu.VMEM((tm, two_f), carry_dtype)],  # [x | y] concat
        ),
        compiler_params=pltpu.CompilerParams(
            # "parallel" lets megacore/dual-TC parts shard the row grid.
            dimension_semantics=("parallel",),
            # Explicit headroom for large tm (v5e scoped default is only 16 MiB);
            # _choose_tm keeps the estimated footprint comfortably below this.
            vmem_limit_bytes=32 * 1024 * 1024,
        ),
    )(x2, y2, wt, b2)

    if split_out:
        xo, yo = out
        return xo.reshape(B, C, H, F), yo.reshape(B, C, H, F)
    out4 = out.reshape(B, C, H, two_f)
    # F not lane-aligned to 128: keep the kernel output lane-dense and do
    # chunk(2, dim=-1) as wrapper glue.
    return out4[..., :F], out4[..., F:]


def _reference_forward(x, y, w, b, depth=2):
    z = jnp.concatenate([x, y], axis=-1)
    for _ in range(depth):
        z = jnp.maximum(z @ w.T + b, 0.0)
    f = x.shape[-1]
    return z[..., :f], z[..., f:]


def _run_case(key, B, C, H, F, depth, tm):
    k1, k2, k3, k4 = jax.random.split(key, 4)
    x = jax.random.normal(k1, (B, C, H, F), dtype=jnp.float32)
    y = jax.random.normal(k2, (B, C, H, F), dtype=jnp.float32)
    two_f = 2 * F
    bound = 1.0 / jnp.sqrt(two_f)
    w = jax.random.uniform(k3, (two_f, two_f), jnp.float32, -bound, bound)
    b = jax.random.uniform(k4, (two_f,), jnp.float32, -bound, bound)

    if tm is None:
        xo, yo = correlation_map_forward(x, y, w, b, depth=depth)
    else:
        xo, yo = correlation_map_forward(x, y, w, b, depth=depth, tm=tm)
    jax.block_until_ready((xo, yo))

    xr, yr = _reference_forward(x, y, w, b, depth=depth)
    assert xo.shape == (B, C, H, F) and yo.shape == (B, C, H, F)
    assert jnp.allclose(xo, xr, atol=1e-3, rtol=1e-3)
    assert jnp.allclose(yo, yr, atol=1e-3, rtol=1e-3)


if __name__ == "__main__":
    key = jax.random.PRNGKey(0)
    k1, k2, k3 = jax.random.split(key, 3)

    # size_features=64 (2F=128): single lane-dense output path, auto tm (>=2 steps).
    _run_case(k1, B=2, C=4, H=16, F=64, depth=2, tm=None)

    # size_features=128: lane-aligned halves -> dual-output path, explicit multi-step grid.
    _run_case(k2, B=2, C=2, H=8, F=128, depth=2, tm=16)

    # Row count not a multiple of 8/tile -> exercises the partial tail block
    # (padded reads, masked write-back) with no wrapper pad/slice.
    _run_case(k3, B=1, C=3, H=10, F=64, depth=2, tm=None)

    print("KERNEL_OK")
</pallas_src>

<mosaic_0001>
module attributes {stable_mosaic.version = 11 : i64} {
  func.func @_corr_kernel(%arg0: i32, %arg1: memref<64x64xf32, #tpu.memory_space<vmem>>, %arg2: memref<64x64xf32, #tpu.memory_space<vmem>>, %arg3: memref<128x128xf32, #tpu.memory_space<vmem>>, %arg4: memref<1x128xf32, #tpu.memory_space<vmem>>, %arg5: memref<64x128xf32, #tpu.memory_space<vmem>>, %arg6: memref<64x128xf32, #tpu.memory_space<vmem>>) attributes {dimension_semantics = [#tpu.dimension_semantics<parallel>], iteration_bounds = array<i64: 2>, scalar_prefetch = 0 : i64, scratch_operands = 1 : i64, tpu.core_type = #tpu.core_type<tc>, window_params = [{transform_indices = @transform_0, window_bounds = array<i64: 64, 64>}, {transform_indices = @transform_1, window_bounds = array<i64: 64, 64>}, {pipeline_mode = #tpu.pipeline_mode<synchronous>, transform_indices = @transform_2, window_bounds = array<i64: 128, 128>}, {pipeline_mode = #tpu.pipeline_mode<synchronous>, transform_indices = @transform_3, window_bounds = array<i64: 1, 128>}, {transform_indices = @transform_4, window_bounds = array<i64: 64, 128>}]} {
    %c0 = arith.constant 0 : index
    %c0_0 = arith.constant 0 : index
    %0 = vector.load %arg3[%c0, %c0_0] : memref<128x128xf32, #tpu.memory_space<vmem>>, vector<128x128xf32>
    %c0_1 = arith.constant 0 : index
    %c0_2 = arith.constant 0 : index
    %1 = vector.load %arg4[%c0_1, %c0_2] : memref<1x128xf32, #tpu.memory_space<vmem>>, vector<1x128xf32>
    %c0_3 = arith.constant 0 : index
    %c0_4 = arith.constant 0 : index
    %2 = vector.load %arg1[%c0_3, %c0_4] : memref<64x64xf32, #tpu.memory_space<vmem>>, vector<64x64xf32>
    %c0_5 = arith.constant 0 : index
    %c0_6 = arith.constant 0 : index
    %3 = vector.load %arg6[%c0_5, %c0_6] : memref<64x128xf32, #tpu.memory_space<vmem>>, vector<64x64xf32>
    tpu.vector_store %arg6[%c0_5, %c0_6], %2 {strides = array<i32>} : memref<64x128xf32, #tpu.memory_space<vmem>>, vector<64x64xf32>,
    %c0_7 = arith.constant 0 : index
    %c0_8 = arith.constant 0 : index
    %4 = vector.load %arg2[%c0_7, %c0_8] : memref<64x64xf32, #tpu.memory_space<vmem>>, vector<64x64xf32>
    %c0_9 = arith.constant 0 : index
    %c64 = arith.constant 64 : index
    %5 = vector.load %arg6[%c0_9, %c64] : memref<64x128xf32, #tpu.memory_space<vmem>>, vector<64x64xf32>
    tpu.vector_store %arg6[%c0_9, %c64], %4 {strides = array<i32>} : memref<64x128xf32, #tpu.memory_space<vmem>>, vector<64x64xf32>,
    %c0_10 = arith.constant 0 : index
    %c0_11 = arith.constant 0 : index
    %6 = vector.load %arg6[%c0_10, %c0_11] : memref<64x128xf32, #tpu.memory_space<vmem>>, vector<64x128xf32>
    %cst = arith.constant dense<0.000000e+00> : vector<64x128xf32>
    %7 = tpu.matmul %6, %0, %cst {dimension_numbers = #tpu.dot_dimension_numbers<[1], [0], [0], [1], [0, 0, 1, 1], [], []>} : vector<64x128xf32>, vector<128x128xf32>, vector<64x128xf32> -> vector<64x128xf32>
    %8 = vector.broadcast %1 : vector<1x128xf32> to vector<64x128xf32>
    %9 = arith.addf %7, %8 : vector<64x128xf32>
    %cst_12 = arith.constant 0.000000e+00 : f32
    %10 = vector.broadcast %cst_12 : f32 to vector<64x128xf32>
    %11 = arith.maximumf %9, %10 : vector<64x128xf32>
    %cst_13 = arith.constant dense<0.000000e+00> : vector<64x128xf32>
    %12 = tpu.matmul %11, %0, %cst_13 {dimension_numbers = #tpu.dot_dimension_numbers<[1], [0], [0], [1], [0, 0, 1, 1], [], []>} : vector<64x128xf32>, vector<128x128xf32>, vector<64x128xf32> -> vector<64x128xf32>
    %13 = vector.broadcast %1 : vector<1x128xf32> to vector<64x128xf32>
    %14 = arith.addf %12, %13 : vector<64x128xf32>
    %cst_14 = arith.constant 0.000000e+00 : f32
    %15 = vector.broadcast %cst_14 : f32 to vector<64x128xf32>
    %16 = arith.maximumf %14, %15 : vector<64x128xf32>
    %c0_15 = arith.constant 0 : index
    %c0_16 = arith.constant 0 : index
    %17 = vector.load %arg5[%c0_15, %c0_16] : memref<64x128xf32, #tpu.memory_space<vmem>>, vector<64x128xf32>
    tpu.vector_store %arg5[%c0_15, %c0_16], %16 {strides = array<i32>} : memref<64x128xf32, #tpu.memory_space<vmem>>, vector<64x128xf32>,
    return
  }
  func.func @transform_0(%arg0: i32) -> (i32, i32) {
    %c0_i32 = arith.constant 0 : i32
    %c0_i32_0 = arith.constant 0 : i32
    return %arg0, %c0_i32 : i32, i32
  }
  func.func @transform_1(%arg0: i32) -> (i32, i32) {
    %c0_i32 = arith.constant 0 : i32
    %c0_i32_0 = arith.constant 0 : i32
    return %arg0, %c0_i32 : i32, i32
  }
  func.func @transform_2(%arg0: i32) -> (i32, i32) {
    %c0_i32 = arith.constant 0 : i32
    %c0_i32_0 = arith.constant 0 : i32
    %c0_i32_1 = arith.constant 0 : i32
    return %c0_i32, %c0_i32_0 : i32, i32
  }
  func.func @transform_3(%arg0: i32) -> (i32, i32) {
    %c0_i32 = arith.constant 0 : i32
    %c0_i32_0 = arith.constant 0 : i32
    %c0_i32_1 = arith.constant 0 : i32
    return %c0_i32, %c0_i32_0 : i32, i32
  }
  func.func @transform_4(%arg0: i32) -> (i32, i32) {
    %c0_i32 = arith.constant 0 : i32
    %c0_i32_0 = arith.constant 0 : i32
    return %arg0, %c0_i32 : i32, i32
  }
}

</mosaic_0001>

<bundles_post_ra>
// kernel: tpu_custom_call.1
= control target key start
LH: loop header
LB: loop body
LE: loop exit
PB: predicated region body
PF: predicated region fallthrough
CT: control target
= control target key end

     0   :  { %9 = vsyncpa [#allocation4], 0  ;;  %s1213_s0 = inlined_call_operand.vmem [shape: f32[128,64], index: 0, kind: input, shape index: {}]   ;;  %s1214_s1 = inlined_call_operand.vmem [shape: f32[128,64], index: 1, kind: input, shape index: {}]   ;;  %s1215_s2 = inlined_call_operand.vmem [shape: f32[128,128], index: 2, kind: input, shape index: {}]   ;;  %s1216_s3 = inlined_call_operand.vmem [shape: f32[1,128], index: 3, kind: input, shape index: {}]   ;;  %s1217_s4 = inlined_call_operand.hbm [shape: f32[128,128], index: 4, kind: output, shape index: {}]  }
   0x1   :  { %11 = vsyncpa [#allocation4 + $0x1], 0  ;;  %s991_s15 = smov 0   ;;  %s993_s16 = smov 0  }
   0x2   :  { %s995_s17 = smov 0   ;;  %s997_s18 = smov 0  }
   0x3 LB: > { %s1012_s19 = sadd.s32 4294967295, %s960_s18   ;;  %s640_s20 = sadd.s32 4294967294, %s960_s18   ;;  %s960_s18 = sphi %s997_s18, %s1223_s18   ;;  %s956_s17 = sphi %s995_s17, %s1222_s17   ;;  %s952_s16 = sphi %s993_s16, %s1221_s16   ;;  %s948_s15 = sphi %s991_s15, %s1220_s15  }
   0x4   : > { %s1016_s21 = sadd.s32 1, %s960_s18   ;;  %s118_s22 = sadd.s32 1, %s956_s17 }
   0x5   : > { %s115_s23 = ssub.s32 %s960_s18, %s1016_s21  ;;  %p128_p0 = scmp.ne.s32.totalorder %s956_s17, %s952_s16 }
   0x6   : > { %p116_p1 = scmp.eq.s32.totalorder %s115_s23, 0  ;;  %p129_p2 = scmp.eq.s32.totalorder %s1012_s19, 1 }
   0x7   : > { %p134_p3 = scmp.ne.s32.totalorder %s952_s16, %s948_s15  ;;  %p135_p4 = scmp.eq.s32.totalorder %s640_s20, 1 }
   0x8   : > { %s1027_s24 = scalar_select %p116_p1, %s956_s17, %s118_s22  }
   0x9   : > { %p1029_p5 = por %p129_p2, %p128_p0  ;;  %p1033_p6 = por %p135_p4, %p134_p3 }
   0xa   : > { %p643_p7 = scmp.ge.s32.totalorder %s960_s18, 1  ;;  %p177_p8 = scmp.lt.s32.totalorder %s960_s18, 3 }
   0xc   : > { %p178_p9 = pnand %p643_p7, %p177_p8 }
   0xd   : > { %s645_s27 = sshll.u32 (!%p178_p9), %s1012_s19, 3  ;;  %v221_v0 = vld [vmem:[%s1215_s2] sm:$0xff] (!%p178_p9)  ;;  %v222_v1 = vld [vmem:[%s1215_s2 + $0x8] sm:$0xff] (!%p178_p9)  ;;  %v223_v2 = vld [vmem:[%s1215_s2 + $0x10] sm:$0xff] (!%p178_p9)  ;;  %s962_s8 = smov (!%p178_p9), 64   ;;  %vm246_vm0 = vcmask (!%p178_p9), 523264  }
   0xe   : > { %181 = sbr.rel (%p178_p9) target bundleno = 614 (0x266), region = 36  ;;  %p209_p10 = scmp.lt.s32.totalorder (!%p178_p9), %s645_s27, 15  ;;  %v792_v3 = vpack.c.bf16 (!%p178_p9), %v222_v1, %v221_v0  ;;  %v224_v4 = vld [vmem:[%s1215_s2 + $0x18] sm:$0xff] (!%p178_p9)  ;;  %v225_v6 = vld [vmem:[%s1215_s2 + $0x20] sm:$0xff] (!%p178_p9)  ;;  %v226_v7 = vld [vmem:[%s1215_s2 + $0x28] sm:$0xff] (!%p178_p9)  ;;  %vm295_vm1 = vcmask (!%p178_p9), 1048064  }
   0xf   : > { %v796_v5 = vpack.c.bf16 (!%p178_p9), %v224_v4, %v223_v2  ;;  %v800_v8 = vpack.c.bf16 (!%p178_p9), %v226_v7, %v225_v6  ;;  %v227_v9 = vld [vmem:[%s1215_s2 + $0x30] sm:$0xff] (!%p178_p9)  ;;  %v228_v12 = vld [vmem:[%s1215_s2 + $0x38] sm:$0xff] (!%p178_p9)  ;;  %v229_v15 = vld [vmem:[%s1215_s2 + $0x40] sm:$0xff] (!%p178_p9)  ;;  %s205_s10 = sand.u32 (!%p178_p9), 1, %s952_s16   ;;  %s655_s13 = sshll.u32 (!%p178_p9), %s1012_s19, 10 }
  0x10   : > { %793 = vmatprep.subr.bf16.mxu0 (!%p178_p9), %v792_v3  ;;  %825 = vmatprep.subr.bf16.mxu1 (!%p178_p9), %v792_v3  ;;  %v230_v16 = vld [vmem:[%s1215_s2 + $0x48] sm:$0xff] (!%p178_p9)  ;;  %v804_v17 = vpack.c.bf16 (!%p178_p9), %v228_v12, %v227_v9  ;;  %v231_v29 = vld [vmem:[%s1215_s2 + $0x50] sm:$0xff] (!%p178_p9)  ;;  %v232_v30 = vld [vmem:[%s1215_s2 + $0x58] sm:$0xff] (!%p178_p9)  ;;  %s644_s11 = sshll.u32 (!%p178_p9), %s205_s10, 6  ;;  %s1166_s28 = scalar_lea.hbm (!%p178_p9), %s1217_s4, %s655_s13 }
  0x11   : > { %795 = vmatpush3.bf16.msra.mxu0 (!%p178_p9), %v792_v3  ;;  %827 = vmatpush3.bf16.msra.mxu1 (!%p178_p9), %v792_v3  ;;  %v808_v28 = vpack.c.bf16 (!%p178_p9), %v230_v16, %v229_v15  ;;  %v812_v33 = vpack.c.bf16 (!%p178_p9), %v232_v30, %v231_v29  ;;  %v233_v34 = vld [vmem:[%s1215_s2 + $0x60] sm:$0xff] (!%p178_p9)  ;;  %v234_v35 = vld [vmem:[%s1215_s2 + $0x68] sm:$0xff] (!%p178_p9)  ;;  %v235_v37 = vld [vmem:[%s1215_s2 + $0x70] sm:$0xff] (!%p178_p9)  ;;  %s207_s12 = scalar_lea.vmem (!%p178_p9), [#allocation3], %s644_s11  ;;  %s1172_s19 = scalar_lea.sflag (!%p178_p9), [#allocation4], %s205_s10 }
  0x12   : > { %797 = vmatprep.subr.bf16.mxu0 (!%p178_p9), %v796_v5  ;;  %829 = vmatprep.subr.bf16.mxu1 (!%p178_p9), %v796_v5  ;;  %v816_v36 = vpack.c.bf16 (!%p178_p9), %v234_v35, %v233_v34  ;;  %v236_v38 = vld [vmem:[%s1215_s2 + $0x78] sm:$0xff] (!%p178_p9)  ;;  %v1141_v56 = vld [vmem:[%s1216_s3] ss:$0 sm:$0xff] (!%p178_p9)  ;;  %s963_s30 = smov (!%p178_p9), [#allocation3]  }
  0x13   : > { %v820_v39 = vpack.c.bf16 (!%p178_p9), %v236_v38, %v235_v37  ;;  %s902_s5 = sshll.u32 (!%p178_p9), %s963_s30, 4  ;;  %s903_s5 = int_to_ptr.vmem [resolvable:$false] %s902_s5 }
  0x15   : > { %s1225_s27 = smov (!%p209_p10, %s645_s27), 15  ;;  %799 = vmatpush3.bf16.msra.mxu0 %v796_v5  ;;  %831 = vmatpush3.bf16.msra.mxu1 %v796_v5 }
  0x16   : > { %s646_s14 = sshll.u32 %s1225_s27, 3  ;;  %801 = vmatprep.subr.bf16.mxu0 %v800_v8  ;;  %833 = vmatprep.subr.bf16.mxu1 %v800_v8 }
  0x17   : > { %s1061_s23 = scalar_lea.vmem %s1214_s1, %s646_s14  ;;  %s1070_s27 = scalar_lea.vmem %s1213_s0, %s646_s14 }
  0x18   : > { %v255_v10 = vld [vmem:[%s1061_s23] sm:$0xff]  ;;  %v257_v11 = vld [vmem:[%s1061_s23 + $0x10] sm:$0xff]  ;;  %v256_v13 = vld [vmem:[%s1061_s23 + $0x8] sm:$0xff]  ;;  %s566_s14 = sshll.u32 %s207_s12, 4  ;;  %s1168_s14 = int_to_ptr.vmem [resolvable:$true] %s566_s14 }
  0x19   : > { %271 = vrot.lane.b32.xlu0 %v255_v10, %s962_s8  ;;  %275 = vrot.lane.b32.xlu1 %v257_v11, %s962_s8  ;;  %v258_v14 = vld [vmem:[%s1061_s23 + $0x18] sm:$0xff]  ;;  %v238_v18 = vld [vmem:[%s1070_s27] sm:$0xff]  ;;  %s898_s29 = scalar_lea.vmem %s1168_s14, 1024  ;;  %p905_p0 = scmp.lt.s32.totalorder %s1168_s14, %s903_s5 }
  0x1a   : > { %v240_v19 = vld [vmem:[%s1070_s27 + $0x10] sm:$0xff]  ;;  %v239_v20 = vld [vmem:[%s1070_s27 + $0x8] sm:$0xff]  ;;  %247 = vst.msk [vmem:[#allocation2] sm:$0xff] %vm246_vm0, %v238_v18  ;;  %v241_v21 = vld [vmem:[%s1070_s27 + $0x18] sm:$0xff]  ;;  %803 = vmatpush3.bf16.msra.mxu0 %v800_v8  ;;  %835 = vmatpush3.bf16.msra.mxu1 %v800_v8  ;;  %p899_p11 = scmp.ne.s32.totalorder %s1168_s14, %s898_s29 }
  0x1b   : > { %249 = vst.msk [vmem:[#allocation2 + $0x10] sm:$0xff] %vm246_vm0, %v240_v19  ;;  %248 = vst.msk [vmem:[#allocation2 + $0x8] sm:$0xff] %vm246_vm0, %v239_v20  ;;  %v242_v22 = vld [vmem:[%s1070_s27 + $0x20] sm:$0xff]  ;;  %v243_v23 = vld [vmem:[%s1070_s27 + $0x28] sm:$0xff]  ;;  %805 = vmatprep.subr.bf16.mxu0 %v804_v17  ;;  %837 = vmatprep.subr.bf16.mxu1 %v804_v17 }
  0x1c   : > { %250 = vst.msk [vmem:[#allocation2 + $0x18] sm:$0xff] %vm246_vm0, %v241_v21  ;;  %251 = vst.msk [vmem:[#allocation2 + $0x20] sm:$0xff] %vm246_vm0, %v242_v22  ;;  %v244_v24 = vld [vmem:[%s1070_s27 + $0x30] sm:$0xff]  ;;  %v245_v25 = vld [vmem:[%s1070_s27 + $0x38] sm:$0xff]  ;;  %p900_p12 = pnand %p899_p11, %p1029_p5 }
  0x1d   : > { %273 = vrot.lane.b32.xlu0 %v256_v13, %s962_s8  ;;  %277 = vrot.lane.b32.xlu1 %v258_v14, %s962_s8  ;;  %252 = vst.msk [vmem:[#allocation2 + $0x28] sm:$0xff] %vm246_vm0, %v243_v23  ;;  %v259_v26 = vld [vmem:[%s1061_s23 + $0x20] sm:$0xff]  ;;  %v260_v27 = vld [vmem:[%s1061_s23 + $0x28] sm:$0xff]  ;;  %253 = vst.msk [vmem:[#allocation2 + $0x30] sm:$0xff] %vm246_vm0, %v244_v24 }
  0x1e   : > { %254 = vst.msk [vmem:[#allocation2 + $0x38] sm:$0xff] %vm246_vm0, %v245_v25  ;;  %v261_v31 = vld [vmem:[%s1061_s23 + $0x30] sm:$0xff]  ;;  %v262_v32 = vld [vmem:[%s1061_s23 + $0x38] sm:$0xff]  ;;  %807 = vmatpush3.bf16.msra.mxu0 %v804_v17  ;;  %839 = vmatpush3.bf16.msra.mxu1 %v804_v17  ;;  %p901_p13 = pneg %p900_p12  ;;  %s904_s23 = scalar_lea.vmem %s903_s5, 2048 }
  0x1f   : > { %809 = vmatprep.subr.bf16.mxu0 %v808_v28  ;;  %841 = vmatprep.subr.bf16.mxu1 %v808_v28  ;;  %p906_p1 = scmp.lt.s32.totalorder %s904_s23, %s898_s29 }
  0x21   : > { %279 = vrot.lane.b32.xlu0 %v259_v26, %s962_s8  ;;  %281 = vrot.lane.b32.xlu1 %v260_v27, %s962_s8  ;;  %p907_p2 = por %p906_p1, %p905_p0 }
  0x22   : > { %811 = vmatpush3.bf16.msra.mxu0 %v808_v28  ;;  %843 = vmatpush3.bf16.msra.mxu1 %v808_v28 }
  0x23   : > { %813 = vmatprep.subr.bf16.mxu0 %v812_v33  ;;  %845 = vmatprep.subr.bf16.mxu1 %v812_v33  ;;  %p908_p3 = pnand %p907_p2, %p901_p13 }
  0x25   : > { %283 = vrot.lane.b32.xlu0 %v261_v31, %s962_s8  ;;  %285 = vrot.lane.b32.xlu1 %v262_v32, %s962_s8 }
  0x26   : > { %815 = vmatpush3.bf16.msra.mxu0 %v812_v33  ;;  %847 = vmatpush3.bf16.msra.mxu1 %v812_v33 }
  0x27   : > { %817 = vmatprep.subr.bf16.mxu0 %v816_v36  ;;  %849 = vmatprep.subr.bf16.mxu1 %v816_v36 }
  0x2a   : > { %819 = vmatpush3.bf16.msra.mxu0 %v816_v36  ;;  %851 = vmatpush3.bf16.msra.mxu1 %v816_v36 }
  0x2b   : > { %821 = vmatprep.subr.bf16.mxu0 %v820_v39  ;;  %853 = vmatprep.subr.bf16.mxu1 %v820_v39 }
  0x2e   : > { %823 = vmatpush3.bf16.msra.mxu0 %v820_v39  ;;  %855 = vmatpush3.bf16.msra.mxu1 %v820_v39 }
  0x8b   : > { %v272_v40 = vpop.permute.xlu0 %271  ;;  %v276_v41 = vpop.permute.xlu1 %275 }
  0x8c   : > { %296 = vst.msk [vmem:[#allocation2] sm:$0xff] %vm295_vm1, %v272_v40  ;;  %298 = vst.msk [vmem:[#allocation2 + $0x10] sm:$0xff] %vm295_vm1, %v276_v41 }
  0x8f   : > { %v274_v42 = vpop.permute.xlu0 %273  ;;  %v278_v43 = vpop.permute.xlu1 %277 }
  0x90   : > { %297 = vst.msk [vmem:[#allocation2 + $0x8] sm:$0xff] %vm295_vm1, %v274_v42  ;;  %299 = vst.msk [vmem:[#allocation2 + $0x18] sm:$0xff] %vm295_vm1, %v278_v43 }
  0x93   : > { %v304_v44 = vld [vmem:[#allocation2] sm:$0xff]  ;;  %v280_v45 = vpop.permute.xlu0 %279  ;;  %v282_v46 = vpop.permute.xlu1 %281  ;;  %v306_v47 = vld [vmem:[#allocation2 + $0x10] sm:$0xff] }
  0x94   : > { %736 = vmatprep.mubr.f32.mxu0 %v304_v44  ;;  %300 = vst.msk [vmem:[#allocation2 + $0x20] sm:$0xff] %vm295_vm1, %v280_v45  ;;  %301 = vst.msk [vmem:[#allocation2 + $0x28] sm:$0xff] %vm295_vm1, %v282_v46 }
  0x97   : > { %v305_v48 = vld [vmem:[#allocation2 + $0x8] sm:$0xff]  ;;  %v284_v49 = vpop.permute.xlu0 %283  ;;  %v286_v50 = vpop.permute.xlu1 %285  ;;  %v307_v51 = vld [vmem:[#allocation2 + $0x18] sm:$0xff] }
  0x98   : > { %737 = vmatmul.mubr.f32.vlgmr.msra.gmra.mrb[0].mxu0 %v305_v48  ;;  %302 = vst.msk [vmem:[#allocation2 + $0x30] sm:$0xff] %vm295_vm1, %v284_v49  ;;  %303 = vst.msk [vmem:[#allocation2 + $0x38] sm:$0xff] %vm295_vm1, %v286_v50 }
  0x99   : > { %739 = vmatprep.mubr.f32.mxu0 %v306_v47 }
  0x9b   : > { %v308_v52 = vld [vmem:[#allocation2 + $0x20] sm:$0xff]  ;;  %v309_v53 = vld [vmem:[#allocation2 + $0x28] sm:$0xff] }
  0x9c   : > { %740 = vmatmul.mubr.f32.gmra.mrb[2].mxu0 %v307_v51 }
  0x9d   : > { %742 = vmatprep.mubr.f32.mxu0 %v308_v52 }
  0x9f   : > { %v310_v54 = vld [vmem:[#allocation2 + $0x30] sm:$0xff]  ;;  %v311_v55 = vld [vmem:[#allocation2 + $0x38] sm:$0xff] }
  0xa0   : > { %743 = vmatmul.mubr.f32.gmra.mrb[4].mxu0 %v309_v53 }
  0xa1   : > { %745 = vmatprep.mubr.f32.mxu0 %v310_v54 }
  0xa4   : > { %746 = vmatmul.mubr.f32.gmra.mrb[6].mxu0 %v311_v55 }
 0x16b   : > { %v738_v57 = vpop.f32.mrb[0].mxu0 }
 0x16c   : > { %v390_v58 = vadd.f32 %v738_v57, %v1141_v56  ;;  %v384_v59 = vpop.f32.mrb[1].mxu0 }
 0x16d   : > { %v385_v60 = vadd.f32 %v1141_v56, %v384_v59 }
 0x16e   : > { %v424_v63 = vmax.f32 %v390_v58, 0.0 }
 0x16f   : > { %v741_v61 = vpop.f32.mrb[2].mxu0  ;;  %v423_v62 = vmax.f32 %v385_v60, 0.0 }
 0x170   : > { %v400_v0 = vadd.f32 %v741_v61, %v1141_v56  ;;  %v394_v1 = vpop.f32.mrb[3].mxu0 }
 0x171   : > { %v395_v2 = vadd.f32 %v1141_v56, %v394_v1  ;;  %780 = vmatprep.mubr.f32.mxu1 %v423_v62 }
 0x172   : > { %781 = vmatmul.mubr.f32.vlgmr.msra.gmra.mrb[0].mxu1 %v424_v63  ;;  %v426_v5 = vmax.f32 %v400_v0, 0.0 }
 0x173   : > { %v425_v3 = vmax.f32 %v395_v2, 0.0  ;;  %v744_v4 = vpop.f32.mrb[4].mxu0 }
 0x174   : > { %v410_v6 = vadd.f32 %v744_v4, %v1141_v56  ;;  %v404_v7 = vpop.f32.mrb[5].mxu0 }
 0x175   : > { %v405_v8 = vadd.f32 %v1141_v56, %v404_v7  ;;  %783 = vmatprep.mubr.f32.mxu1 %v425_v3 }
 0x176   : > { %784 = vmatmul.mubr.f32.gmra.mrb[2].mxu1 %v426_v5  ;;  %v428_v11 = vmax.f32 %v410_v6, 0.0 }
 0x177   : > { %v427_v9 = vmax.f32 %v405_v8, 0.0  ;;  %v747_v10 = vpop.f32.mrb[6].mxu0 }
 0x178   : > { %v420_v12 = vadd.f32 %v747_v10, %v1141_v56  ;;  %v414_v13 = vpop.f32.mrb[7].mxu0 }
 0x179   : > { %v415_v14 = vadd.f32 %v1141_v56, %v414_v13  ;;  %786 = vmatprep.mubr.f32.mxu1 %v427_v9 }
 0x17a   : > { %787 = vmatmul.mubr.f32.gmra.mrb[4].mxu1 %v428_v11  ;;  %v430_v16 = vmax.f32 %v420_v12, 0.0 }
 0x17b   : > { %v429_v15 = vmax.f32 %v415_v14, 0.0 }
 0x17d   : > { %789 = vmatprep.mubr.f32.mxu1 %v429_v15 }
 0x17e   : > { %790 = vmatmul.mubr.f32.gmra.mrb[6].mxu1 %v430_v16 }
 0x245   : > { %v782_v17 = vpop.f32.mrb[0].mxu1 }
 0x246   : > { %v503_v18 = vadd.f32 %v782_v17, %v1141_v56  ;;  %v497_v19 = vpop.f32.mrb[1].mxu1 }
 0x247   : > { %v498_v20 = vadd.f32 %v1141_v56, %v497_v19 }
 0x248   : > { %v537_v21 = vmax.f32 %v503_v18, 0.0 }
 0x249   : > { %v536_v22 = vmax.f32 %v498_v20, 0.0  ;;  %v785_v23 = vpop.f32.mrb[2].mxu1 }
 0x24a   : > { %545 = vst [vmem:[%s207_s12 + $0x8] sm:$0xff] %v537_v21  ;;  %v513_v24 = vadd.f32 %v785_v23, %v1141_v56  ;;  %v507_v25 = vpop.f32.mrb[3].mxu1 }
 0x24b   : > { %544 = vst [vmem:[%s207_s12] sm:$0xff] %v536_v22  ;;  %v508_v26 = vadd.f32 %v1141_v56, %v507_v25 }
 0x24c   : > { %v539_v27 = vmax.f32 %v513_v24, 0.0 }
 0x24d   : > { %v538_v28 = vmax.f32 %v508_v26, 0.0  ;;  %v788_v29 = vpop.f32.mrb[4].mxu1 }
 0x24e   : > { %547 = vst [vmem:[%s207_s12 + $0x18] sm:$0xff] %v539_v27  ;;  %v523_v30 = vadd.f32 %v788_v29, %v1141_v56  ;;  %v517_v31 = vpop.f32.mrb[5].mxu1 }
 0x24f   : > { %546 = vst [vmem:[%s207_s12 + $0x10] sm:$0xff] %v538_v28  ;;  %v518_v32 = vadd.f32 %v1141_v56, %v517_v31 }
 0x250   : > { %v541_v33 = vmax.f32 %v523_v30, 0.0 }
 0x251   : > { %v540_v34 = vmax.f32 %v518_v32, 0.0  ;;  %v791_v35 = vpop.f32.mrb[6].mxu1 }
 0x252   : > { %549 = vst [vmem:[%s207_s12 + $0x28] sm:$0xff] %v541_v33  ;;  %v533_v36 = vadd.f32 %v791_v35, %v1141_v56  ;;  %v527_v37 = vpop.f32.mrb[7].mxu1 }
 0x253   : > { %548 = vst [vmem:[%s207_s12 + $0x20] sm:$0xff] %v540_v34  ;;  %v528_v38 = vadd.f32 %v1141_v56, %v527_v37 }
 0x254   : > { %v543_v39 = vmax.f32 %v533_v36, 0.0 }
 0x255   : > { %v542_v40 = vmax.f32 %v528_v38, 0.0 }
 0x256   : > { %551 = vst [vmem:[%s207_s12 + $0x38] sm:$0xff] %v543_v39 }
 0x257   : > { %550 = vst [vmem:[%s207_s12 + $0x30] sm:$0xff] %v542_v40 }
 0x258   : > { %911 = shalt.err (!%p908_p3)
}
 0x259   : > { %s912_s27 = scalar_lea.hbm %s1166_s28, 1024  ;;  %s916_s8 = scalar_lea.hbm %s1217_s4, 2048 }
 0x25a   : > { %p913_p4 = scmp.ne.s32.totalorder %s1166_s28, %s912_s27  ;;  %p917_p9 = scmp.lt.u32.totalorder %s1166_s28, %s1217_s4 }
 0x25b   : > { %p918_p10 = scmp.lt.u32.totalorder %s916_s8, %s912_s27  ;;  %p920_p12 = scmp.lt.u32.totalorder %s912_s27, %s1166_s28 }
 0x25c   : > { %p914_p7 = pnand %p913_p4, %p1029_p5 }
 0x25d   : > { %p919_p11 = por %p918_p10, %p917_p9 }
 0x25e   : > { %p915_p8 = pneg %p914_p7 }
 0x25f   : > { %p921_p13 = por %p920_p12, %p919_p11 }
 0x261   : > { %p922_p0 = pnand %p921_p13, %p915_p8 }
 0x263   : > { %925 = shalt.err (!%p922_p0)
}
 0x264   : > { %s964_s11 = smov 128   ;;  %s965_s12 = smov 8  }
 0x265   : > { %856 = dma.vmem_to_hbm [thread:$0]  (%p1029_p5), %s1168_s14, 1024, %s1166_s28, %s1172_s19, %s964_s11, %s964_s11, %s965_s12  }
 0x266 PF: > { %p862_p1 = scmp.ge.s32.totalorder %s960_s18, 2  ;;  %s581_s13 = sand.u32 1, %s948_s15  }
 0x267   : > { %s582_s20 = scalar_lea.sflag [#allocation4], %s581_s13 }
 0x268   : > { %p859_p2 = pnand %p862_p1, %p1033_p6 }
 0x26a   : > { %943 = dma.done.wait (!%p859_p2), %s582_s20, 1024  }
 0x26b   : > { %945 = vsyncadd (!%p859_p2), %s582_s20, 4294966272  ;;  %p14_p3 = scmp.ge.s32.totalorder %s1016_s21, 4   ;;  %s1220_s15 = smov %s952_s16 }
 0x26c   : > { %s1221_s16 = smov %s956_s17  ;;  %s1222_s17 = smov %s1027_s24 }
 0x26d   : > { %s1223_s18 = smov %s1016_s21  ;;  %16 = sbr.rel (!%p14_p3) target bundleno = 3 (0x3), region = 74 }
 0x274   :  { %587 = vsyncpa [#allocation4], 1 }
 0x275   :  { %589 = vsyncpa [#allocation4 + $0x1], 1 }

</bundles_post_ra>
